<compile_context>
chip_gen: v6e
topology: v6e:2x2x1
jax: 0.10.0
libtpu: 0.0.40
codegen_flags: <defaults>
</compile_context>

<pallas_src>
import functools

import jax
import jax.numpy as jnp
from jax.experimental import pallas as pl
from jax.experimental.pallas import tpu as pltpu

LANE = 128  # lane width; batch tile must be a multiple of this


def _round_up(a, m):
    return ((a + m - 1) // m) * m


def _cdiv(a, m):
    return (a + m - 1) // m


def mlp_kernel(xT_ref, w1_ref, b1_ref, w2_ref, b2_ref, w3_ref, b3_ref, o_ref):
    # Batch-in-lanes layout: one (in_dim, TB) tile of xT per grid step.
    # Weights/biases are VMEM-resident (constant index maps). 3 fused MXU matmuls,
    # f32 accumulation + f32 bias/ReLU on the VPU, bf16 operands for the MXU.
    xT = xT_ref[...]                                                       # bf16 (10, TB)
    h1 = jnp.dot(w1_ref[...], xT, preferred_element_type=jnp.float32) + b1_ref[...]
    h1 = jnp.maximum(h1, 0.0).astype(jnp.bfloat16)                         # (16, TB)
    h2 = jnp.dot(w2_ref[...], h1, preferred_element_type=jnp.float32) + b2_ref[...]
    h2 = jnp.maximum(h2, 0.0).astype(jnp.bfloat16)                         # (16, TB)
    out = jnp.dot(w3_ref[...], h2, preferred_element_type=jnp.float32) + b3_ref[...]
    o_ref[...] = out.astype(o_ref.dtype)                                   # (4, TB) lane-dense store


def pack_params(w1, b1, w2, b2, w3, b3):
    """One-time packing: bf16 weights in PyTorch [out, in] layout, f32 (out, 1) biases."""
    return (
        jnp.asarray(w1, jnp.bfloat16), jnp.asarray(b1, jnp.float32).reshape(-1, 1),
        jnp.asarray(w2, jnp.bfloat16), jnp.asarray(b2, jnp.float32).reshape(-1, 1),
        jnp.asarray(w3, jnp.bfloat16), jnp.asarray(b3, jnp.float32).reshape(-1, 1),
    )


@functools.partial(jax.jit, static_argnames=("tb",))
def mlp_forward(x, params, *, tb=2048):
    w1, b1, w2, b2, w3, b3 = params
    B, in_dim = x.shape
    h1_dim = w1.shape[0]
    h2_dim = w2.shape[0]
    out_dim = w3.shape[0]

    # --- batch tiling: lanes must be a multiple of 128; prefer >=2 grid steps (v7x megacore) ---
    b_lanes = _round_up(B, LANE)
    n_steps = max(1, _cdiv(b_lanes, tb))
    if n_steps == 1 and b_lanes >= 2 * LANE:
        n_steps = 2
    TB = _round_up(_cdiv(b_lanes, n_steps), LANE)
    Bp = n_steps * TB

    # --- single fused wrapper pass over x: transpose + bf16 cast + lane pad ---
    xT = jnp.transpose(x).astype(jnp.bfloat16)            # (in_dim, B)
    if Bp != B:
        xT = jnp.pad(xT, ((0, 0), (0, Bp - B)))           # (in_dim, Bp)

    flops = 2 * Bp * (in_dim * h1_dim + h1_dim * h2_dim + h2_dim * out_dim)
    bytes_accessed = (
        in_dim * Bp * 2                                    # bf16 xT
        + (w1.size + w2.size + w3.size) * 2                # bf16 weights
        + (b1.size + b2.size + b3.size) * 4                # f32 biases
        + out_dim * Bp * 4                                 # f32 output (lane-dense, no padding)
    )

    batch_spec = lambda rows: pl.BlockSpec((rows, TB), lambda i: (0, i))
    const_spec = lambda shape: pl.BlockSpec(shape, lambda i: (0, 0))

    out_t = pl.pallas_call(
        mlp_kernel,
        out_shape=jax.ShapeDtypeStruct((out_dim, Bp), jnp.float32),
        grid=(n_steps,),
        in_specs=[
            batch_spec(in_dim),
            const_spec(w1.shape), const_spec(b1.shape),
            const_spec(w2.shape), const_spec(b2.shape),
            const_spec(w3.shape), const_spec(b3.shape),
        ],
        out_specs=batch_spec(out_dim),
        compiler_params=pltpu.CompilerParams(
            dimension_semantics=("parallel",),             # megacore-shard batch on v7x
            vmem_limit_bytes=32 * 1024 * 1024,
        ),
        cost_estimate=pl.CostEstimate(
            flops=flops, transcendentals=0, bytes_accessed=bytes_accessed),
    )(xT, w1, b1, w2, b2, w3, b3)

    # (4, Bp) -> (B, 4); only the real 16 B/row were ever written to HBM.
    return jnp.transpose(out_t[:, :B])


def mlp_ref(x, params):
    # Plain-JAX reference using the same bf16-operand / f32-accumulate path.
    w1, b1, w2, b2, w3, b3 = params
    xb = x.astype(jnp.bfloat16)
    h = jnp.maximum(jnp.dot(xb, w1.T, preferred_element_type=jnp.float32) + b1.T, 0.0)
    h = jnp.maximum(
        jnp.dot(h.astype(jnp.bfloat16), w2.T, preferred_element_type=jnp.float32) + b2.T, 0.0)
    return jnp.dot(h.astype(jnp.bfloat16), w3.T, preferred_element_type=jnp.float32) + b3.T


def init_params(key):
    # Deterministic init mimicking nn.Linear's uniform(-1/sqrt(fan_in), +1/sqrt(fan_in)),
    # weights stored in PyTorch layout [out_features, in_features].
    dims = [(10, 16), (16, 16), (16, 4)]
    params = []
    for fan_in, fan_out in dims:
        key, kw, kb = jax.random.split(key, 3)
        bound = 1.0 / float(fan_in) ** 0.5
        w = jax.random.uniform(kw, (fan_out, fan_in), jnp.float32, -bound, bound)
        b = jax.random.uniform(kb, (fan_out,), jnp.float32, -bound, bound)
        params.extend([w, b])
    return params


if __name__ == "__main__":
    key = jax.random.PRNGKey(0)
    kx, kp = jax.random.split(key)

    # batch=200: not a multiple of 128 (exercises lane padding) and >=256 lanes
    # after rounding, so the grid has 2 steps and the parallel axis is exercised.
    batch = 200
    x = jax.random.normal(kx, (batch, 10), jnp.float32)

    raw = init_params(kp)
    params = pack_params(*raw)          # one-time parameter packing (hoisted out of forward)

    out = mlp_forward(x, params)
    out = jax.block_until_ready(out)
    assert out.shape == (batch, 4), out.shape

    ref = mlp_ref(x, params)
    err = float(jnp.max(jnp.abs(out - ref)))
    assert jnp.allclose(out, ref, atol=1e-2, rtol=1e-2), err
    print("KERNEL_OK")
</pallas_src>

<mosaic_0001>
module attributes {stable_mosaic.version = 11 : i64} {
  func.func @mlp_kernel(%arg0: i32, %arg1: memref<10x128xbf16, #tpu.memory_space<vmem>>, %arg2: memref<16x10xbf16, #tpu.memory_space<vmem>>, %arg3: memref<16x1xf32, #tpu.memory_space<vmem>>, %arg4: memref<16x16xbf16, #tpu.memory_space<vmem>>, %arg5: memref<16x1xf32, #tpu.memory_space<vmem>>, %arg6: memref<4x16xbf16, #tpu.memory_space<vmem>>, %arg7: memref<4x1xf32, #tpu.memory_space<vmem>>, %arg8: memref<4x128xf32, #tpu.memory_space<vmem>>) attributes {dimension_semantics = [#tpu.dimension_semantics<parallel>], iteration_bounds = array<i64: 2>, scalar_prefetch = 0 : i64, scratch_operands = 0 : i64, tpu.core_type = #tpu.core_type<tc>, window_params = [{transform_indices = @transform_0, window_bounds = array<i64: 10, 128>}, {pipeline_mode = #tpu.pipeline_mode<synchronous>, transform_indices = @transform_1, window_bounds = array<i64: 16, 10>}, {pipeline_mode = #tpu.pipeline_mode<synchronous>, transform_indices = @transform_2, window_bounds = array<i64: 16, 1>}, {pipeline_mode = #tpu.pipeline_mode<synchronous>, transform_indices = @transform_3, window_bounds = array<i64: 16, 16>}, {pipeline_mode = #tpu.pipeline_mode<synchronous>, transform_indices = @transform_4, window_bounds = array<i64: 16, 1>}, {pipeline_mode = #tpu.pipeline_mode<synchronous>, transform_indices = @transform_5, window_bounds = array<i64: 4, 16>}, {pipeline_mode = #tpu.pipeline_mode<synchronous>, transform_indices = @transform_6, window_bounds = array<i64: 4, 1>}, {transform_indices = @transform_7, window_bounds = array<i64: 4, 128>}]} {
    %c0 = arith.constant 0 : index
    %c0_0 = arith.constant 0 : index
    %0 = vector.load %arg1[%c0, %c0_0] : memref<10x128xbf16, #tpu.memory_space<vmem>>, vector<10x128xbf16>
    %c0_1 = arith.constant 0 : index
    %c0_2 = arith.constant 0 : index
    %1 = vector.load %arg2[%c0_1, %c0_2] : memref<16x10xbf16, #tpu.memory_space<vmem>>, vector<16x10xbf16>
    %cst = arith.constant dense<0.000000e+00> : vector<16x128xf32>
    %2 = tpu.matmul %1, %0, %cst {dimension_numbers = #tpu.dot_dimension_numbers<[1], [0], [0], [1], [0, 0, 1, 1], [], []>} : vector<16x10xbf16>, vector<10x128xbf16>, vector<16x128xf32> -> vector<16x128xf32>
    %c0_3 = arith.constant 0 : index
    %c0_4 = arith.constant 0 : index
    %3 = vector.load %arg3[%c0_3, %c0_4] : memref<16x1xf32, #tpu.memory_space<vmem>>, vector<16x1xf32>
    %4 = vector.broadcast %3 : vector<16x1xf32> to vector<16x128xf32>
    %5 = arith.addf %2, %4 : vector<16x128xf32>
    %cst_5 = arith.constant 0.000000e+00 : f32
    %6 = vector.broadcast %cst_5 : f32 to vector<16x128xf32>
    %7 = arith.maximumf %5, %6 : vector<16x128xf32>
    %8 = arith.truncf %7 : vector<16x128xf32> to vector<16x128xbf16>
    %c0_6 = arith.constant 0 : index
    %c0_7 = arith.constant 0 : index
    %9 = vector.load %arg4[%c0_6, %c0_7] : memref<16x16xbf16, #tpu.memory_space<vmem>>, vector<16x16xbf16>
    %cst_8 = arith.constant dense<0.000000e+00> : vector<16x128xf32>
    %10 = tpu.matmul %9, %8, %cst_8 {dimension_numbers = #tpu.dot_dimension_numbers<[1], [0], [0], [1], [0, 0, 1, 1], [], []>} : vector<16x16xbf16>, vector<16x128xbf16>, vector<16x128xf32> -> vector<16x128xf32>
    %c0_9 = arith.constant 0 : index
    %c0_10 = arith.constant 0 : index
    %11 = vector.load %arg5[%c0_9, %c0_10] : memref<16x1xf32, #tpu.memory_space<vmem>>, vector<16x1xf32>
    %12 = vector.broadcast %11 : vector<16x1xf32> to vector<16x128xf32>
    %13 = arith.addf %10, %12 : vector<16x128xf32>
    %cst_11 = arith.constant 0.000000e+00 : f32
    %14 = vector.broadcast %cst_11 : f32 to vector<16x128xf32>
    %15 = arith.maximumf %13, %14 : vector<16x128xf32>
    %16 = arith.truncf %15 : vector<16x128xf32> to vector<16x128xbf16>
    %c0_12 = arith.constant 0 : index
    %c0_13 = arith.constant 0 : index
    %17 = vector.load %arg6[%c0_12, %c0_13] : memref<4x16xbf16, #tpu.memory_space<vmem>>, vector<4x16xbf16>
    %cst_14 = arith.constant dense<0.000000e+00> : vector<4x128xf32>
    %18 = tpu.matmul %17, %16, %cst_14 {dimension_numbers = #tpu.dot_dimension_numbers<[1], [0], [0], [1], [0, 0, 1, 1], [], []>} : vector<4x16xbf16>, vector<16x128xbf16>, vector<4x128xf32> -> vector<4x128xf32>
    %c0_15 = arith.constant 0 : index
    %c0_16 = arith.constant 0 : index
    %19 = vector.load %arg7[%c0_15, %c0_16] : memref<4x1xf32, #tpu.memory_space<vmem>>, vector<4x1xf32>
    %20 = vector.broadcast %19 : vector<4x1xf32> to vector<4x128xf32>
    %21 = arith.addf %18, %20 : vector<4x128xf32>
    %c0_17 = arith.constant 0 : index
    %c0_18 = arith.constant 0 : index
    %22 = vector.load %arg8[%c0_17, %c0_18] : memref<4x128xf32, #tpu.memory_space<vmem>>, vector<4x128xf32>
    tpu.vector_store %arg8[%c0_17, %c0_18], %21 {strides = array<i32>} : memref<4x128xf32, #tpu.memory_space<vmem>>, vector<4x128xf32>,
    return
  }
  func.func @transform_0(%arg0: i32) -> (i32, i32) {
    %c0_i32 = arith.constant 0 : i32
    %c0_i32_0 = arith.constant 0 : i32
    return %c0_i32, %arg0 : i32, i32
  }
  func.func @transform_1(%arg0: i32) -> (i32, i32) {
    %c0_i32 = arith.constant 0 : i32
    %c0_i32_0 = arith.constant 0 : i32
    %c0_i32_1 = arith.constant 0 : i32
    return %c0_i32, %c0_i32_0 : i32, i32
  }
  func.func @transform_2(%arg0: i32) -> (i32, i32) {
    %c0_i32 = arith.constant 0 : i32
    %c0_i32_0 = arith.constant 0 : i32
    %c0_i32_1 = arith.constant 0 : i32
    return %c0_i32, %c0_i32_0 : i32, i32
  }
  func.func @transform_3(%arg0: i32) -> (i32, i32) {
    %c0_i32 = arith.constant 0 : i32
    %c0_i32_0 = arith.constant 0 : i32
    %c0_i32_1 = arith.constant 0 : i32
    return %c0_i32, %c0_i32_0 : i32, i32
  }
  func.func @transform_4(%arg0: i32) -> (i32, i32) {
    %c0_i32 = arith.constant 0 : i32
    %c0_i32_0 = arith.constant 0 : i32
    %c0_i32_1 = arith.constant 0 : i32
    return %c0_i32, %c0_i32_0 : i32, i32
  }
  func.func @transform_5(%arg0: i32) -> (i32, i32) {
    %c0_i32 = arith.constant 0 : i32
    %c0_i32_0 = arith.constant 0 : i32
    %c0_i32_1 = arith.constant 0 : i32
    return %c0_i32, %c0_i32_0 : i32, i32
  }
  func.func @transform_6(%arg0: i32) -> (i32, i32) {
    %c0_i32 = arith.constant 0 : i32
    %c0_i32_0 = arith.constant 0 : i32
    %c0_i32_1 = arith.constant 0 : i32
    return %c0_i32, %c0_i32_0 : i32, i32
  }
  func.func @transform_7(%arg0: i32) -> (i32, i32) {
    %c0_i32 = arith.constant 0 : i32
    %c0_i32_0 = arith.constant 0 : i32
    return %c0_i32, %arg0 : i32, i32
  }
}

</mosaic_0001>

<bundles_post_ra>
// kernel: mlp_forward.1
= control target key start
LH: loop header
LB: loop body
LE: loop exit
PB: predicated region body
PF: predicated region fallthrough
CT: control target
= control target key end

     0   :  { %s720_s24 = smov 0   ;;  %s722_s25 = smov 0   ;;  %s801_s0 = inlined_call_operand.vmem [shape: bf16[10,256], index: 0, kind: input, shape index: {}]   ;;  %s802_s1 = inlined_call_operand.vmem [shape: bf16[16,10], index: 1, kind: input, shape index: {}]   ;;  %s803_s2 = inlined_call_operand.vmem [shape: f32[16,1], index: 2, kind: input, shape index: {}]   ;;  %s804_s3 = inlined_call_operand.vmem [shape: bf16[16,16], index: 3, kind: input, shape index: {}]   ;;  %s805_s4 = inlined_call_operand.vmem [shape: f32[16,1], index: 4, kind: input, shape index: {}]   ;;  %s806_s5 = inlined_call_operand.vmem [shape: bf16[4,16], index: 5, kind: input, shape index: {}]   ;;  %s807_s6 = inlined_call_operand.vmem [shape: f32[4,1], index: 6, kind: input, shape index: {}]   ;;  %s808_s7 = inlined_call_operand.vmem [shape: f32[4,256], index: 7, kind: output, shape index: {}]  }
   0x1   :  { %s724_s26 = smov 0  }
   0x2 LB: > { %s580_s27 = sadd.s32 4294967295, %s675_s26   ;;  %s737_s28 = sadd.s32 1, %s675_s26   ;;  %s675_s26 = sphi %s724_s26, %s811_s26   ;;  %s671_s25 = sphi %s722_s25, %s810_s25   ;;  %s667_s24 = sphi %s720_s24, %s809_s24  }
   0x3   : > { %s21_s29 = ssub.s32 %s675_s26, %s737_s28  ;;  %s24_s30 = sadd.s32 1, %s671_s25 }
   0x4   : > { %p22_p0 = scmp.eq.s32.totalorder %s21_s29, 0  ;;  %p31_p1 = scmp.ne.s32.totalorder %s671_s25, %s667_s24 }
   0x5   : > { %p32_p2 = scmp.eq.s32.totalorder %s675_s26, 0  ;;  %p583_p4 = scmp.ge.s32.totalorder %s675_s26, 2 }
   0x6   : > { %s746_s8 = scalar_select %p22_p0, %s671_s25, %s24_s30  }
   0x7   : > { %p33_p3 = por %p32_p2, %p31_p1  ;;  %227 = sbr.rel (%p583_p4) target bundleno = 17 (0x11), region = 40 }
   0xc   : > { %230 = sbr.rel (!%p33_p3) target bundleno = 17 (0x11), region = 44  ;;  %s232_s9 = sand.u32 (%p33_p3), 1, %s671_s25  }
   0xd   : > { %s585_s10 = sshll.u32 (%p33_p3), %s675_s26, 2  ;;  %s584_s11 = sshll.u32 (%p33_p3), %s232_s9, 3 }
   0xe   : > { %s236_s14 = scalar_lea.vmem (%p33_p3), %s801_s0, %s585_s10  ;;  %s234_s15 = scalar_lea.vmem (%p33_p3), [#allocation2], %s584_s11 }
   0xf   : > { %v253_v0 = vld [vmem:[%s236_s14] sm:$0xf] (%p33_p3)  ;;  %v255_v1 = vld [vmem:[%s236_s14 + $0x8] sm:$0xf] (%p33_p3) }
  0x10   : > { %254 = vst [vmem:[%s234_s15] sm:$0xf] (%p33_p3), %v253_v0  ;;  %256 = vst [vmem:[%s234_s15 + $0x4] sm:$0xf] (%p33_p3), %v255_v1 }
  0x11 PF: > { %p586_p5 = scmp.ge.s32.totalorder %s675_s26, 1  ;;  %p283_p6 = scmp.lt.s32.totalorder %s675_s26, 3 }
  0x13   : > { %p284_p7 = pnand %p586_p5, %p283_p6 }
  0x14   : > { %s290_s16 = sand.u32 (!%p284_p7), 1, %s667_s24   ;;  %p320_p8 = scmp.lt.s32.totalorder (!%p284_p7), %s580_s27, 1 }
  0x15   : > { %287 = sbr.rel (%p284_p7) target bundleno = 644 (0x284), region = 85  ;;  %s587_s17 = sshll.u32 (!%p284_p7), %s290_s16, 3 }
  0x16   : > { %s292_s20 = scalar_lea.vmem (!%p284_p7), [#allocation2], %s587_s17 }
  0x1a   : > { %v677_v2 = vmov 0.0   ;;  %vm678_vm0 = vmmov 0   ;;  %vm355_vm1 = vcmask 1044480   ;;  %v679_v3 = vmov 0   ;;  %v329_v4 = vld [vmem:[%s803_s2] sm:$0xff]  ;;  %v330_v6 = vld [vmem:[%s803_s2 + $0x8] sm:$0xff] }
  0x1b   : > { %603 = vmatprep.subr.bf16.mxu0 %v677_v2  ;;  %605 = vmatprep.mubr.msk.bf16.mxu0 %vm678_vm0, %v677_v2  ;;  %v650_v5 = vld [vmem:[%s292_s20] sm:$0x1f]   ;;  %vm351_vm2 = vcmask 80896   ;;  %vm422_vm3 = vcmask 130048   ;;  %s813_s27 = smov (!%p320_p8, %s580_s27), 1 }
  0x1c   : > { %648 = vset.pattern.permute.xlu0 %v679_v3  ;;  %609 = vmatprep.subr.bf16.mxu1 %v677_v2  ;;  %v357_v7 = vsel %vm355_vm1, %v650_v5, 0  ;;  %v651_v8 = vld [vmem:[%s802_s1] sm:$0xff]   ;;  %v406_v11 = vld [vmem:[%s805_s4 + $0x8] sm:$0xff]  ;;  %s588_s17 = sshll.u32 %s813_s27, 2 }
  0x1d   : > { %333 = vperm.xlu0 %648, %v329_v4   ;;  %611 = vmatprep.mubr.msk.bf16.mxu1 %vm678_vm0, %v677_v2  ;;  %v471_v9 = vld [vmem:[%s807_s6] sm:$0xf]  ;;  %s323_s20 = scalar_lea.vmem %s808_s7, %s588_s17 }
  0x1e   : > { %649 = vset.pattern.permute.xlu1 %v679_v3  ;;  %604 = vmatpush3.bf16.msra.mxu0 %v357_v7  ;;  %v405_v10 = vld [vmem:[%s805_s4] sm:$0xff] }
  0x1f   : > { %615 = vmatprep.subr.bf16.mxu0 %v677_v2  ;;  %409 = vperm.xlu1 %649, %v405_v10   ;;  %v652_v23 = vld [vmem:[%s804_s3] sm:$0xff]  }
  0x20   : > { %v470_v35 = vld [vmem:[%s806_s5] sm:$0x3] }
  0x21   : > { %338 = vperm.xlu0 %648, %v330_v6   ;;  %606 = vmatmul.mubr.msk.bf16.vlgmr.msra.gmra.mxu0 %vm351_vm2, %v651_v8 }
  0x22   : > { %617 = vmatprep.mubr.msk.bf16.mxu0 %vm678_vm0, %v677_v2 }
  0x23   : > { %414 = vperm.xlu1 %649, %v406_v11  }
  0x25   : > { %474 = vperm.xlu0 %648, %v471_v9  }
  0x98   : > { %v334_v12 = vpop.permute.xlu0 %333 }
  0x9a   : > { %v410_v24 = vpop.permute.xlu1 %409 }
  0x9c   : > { %v339_v16 = vpop.permute.xlu0 %338 }
  0x9e   : > { %v415_v28 = vpop.permute.xlu1 %414 }
  0xa0   : > { %v475_v36 = vpop.permute.xlu0 %474 }
  0xe1   : > { %v393_v13 = vpop.f32.mrf.mxu0 }
  0xe2   : > { %v394_v15 = vadd.f32 %v393_v13, %v334_v12 }
  0xe3   : > { %v607_v14 = vpop.f32.mrf.mxu0 }
  0xe4   : > { %v400_v20 = vmax.f32 %v394_v15, 0.0 }
  0xe5   : > { %v396_v17 = vpop.f32.mrf.mxu0 }
  0xe6   : > { %v397_v18 = vadd.f32 %v396_v17, %v339_v16 }
  0xe7   : > { %v608_v19 = vpop.f32.mrf.mxu0 }
  0xe8   : > { %v401_v21 = vmax.f32 %v397_v18, 0.0 }
  0xea   : > { %v402_v22 = vpack.c.bf16 %v401_v21, %v400_v20 }
  0xec   : > { %610 = vmatpush3.bf16.msra.mxu1 %v402_v22 }
  0xef   : > { %612 = vmatmul.mubr.msk.bf16.vlgmr.msra.gmra.mxu1 %vm422_vm3, %v652_v23 }
 0x1af   : > { %v460_v25 = vpop.f32.mrf.mxu1 }
 0x1b0   : > { %v461_v27 = vadd.f32 %v460_v25, %v410_v24 }
 0x1b1   : > { %v613_v26 = vpop.f32.mrf.mxu1 }
 0x1b2   : > { %v467_v32 = vmax.f32 %v461_v27, 0.0 }
 0x1b3   : > { %v463_v29 = vpop.f32.mrf.mxu1 }
 0x1b4   : > { %v464_v30 = vadd.f32 %v463_v29, %v415_v28 }
 0x1b5   : > { %v614_v31 = vpop.f32.mrf.mxu1 }
 0x1b6   : > { %v468_v33 = vmax.f32 %v464_v30, 0.0 }
 0x1b8   : > { %v469_v34 = vpack.c.bf16 %v468_v33, %v467_v32 }
 0x1ba   : > { %616 = vmatpush3.bf16.msra.mxu0 %v469_v34 }
 0x1bd   : > { %618 = vmatmul.mubr.msk.bf16.vlgmr.msra.gmra.mxu0 %vm422_vm3, %v470_v35 }
 0x27d   : > { %v514_v37 = vpop.f32.mrf.mxu0 }
 0x27e   : > { %v515_v38 = vadd.f32 %v514_v37, %v475_v36 }
 0x27f   : > { %v619_v39 = vpop.f32.mrf.mxu0 }
 0x280   : > { %520 = vst [vmem:[%s323_s20] sm:$0xf] %v515_v38 }
 0x281   : > { %v517_v40 = vpop.f32.mrf.mxu0 }
 0x283   : > { %v620_v41 = vpop.f32.mrf.mxu0 }
 0x284 PF: > { %p14_p9 = scmp.ge.s32.totalorder %s737_s28, 4   ;;  %s809_s24 = smov %s671_s25 }
 0x285   : > { %s810_s25 = smov %s746_s8  ;;  %s811_s26 = smov %s737_s28 }
 0x286   :  { %16 = sbr.rel (!%p14_p9) target bundleno = 2 (0x2), region = 124 }

</bundles_post_ra>
